<compile_context>
chip_gen: v5e
topology: v5e:2x2
jax: 0.10.0
libtpu: 0.0.40
codegen_flags: <defaults>
</compile_context>

<pallas_src>
import numpy as np
import jax
import jax.numpy as jnp
from jax.experimental import pallas as pl
from jax.experimental.pallas import tpu as pltpu


# ----------------------------- small helpers -----------------------------
def _round_up(x, m):
    return ((x + m - 1) // m) * m


def _rout(nrel):
    # narrow padded output width (kept small: 32 B/row instead of 512 B/row)
    return max(8, _round_up(nrel, 8))


def _choose_edge_tile(n_edges):
    """Edge-row tile: sublane-aligned, <= 512 rows, and >= 2 grid steps whenever
    there is more than one 8-row group (v7x shards the 'parallel' axis over 2 TCs)."""
    ep8 = _round_up(max(n_edges, 1), 8)
    if ep8 <= 8:
        return 8
    return min(512, _round_up((ep8 + 1) // 2, 8))


# ------------------------- host-side parameter repack -------------------------
def prepare_ntl_params(w, v, b, u, *, bilinear=True, bn_gamma=None, bn_beta=None,
                       bn_mean=None, bn_var=None, eps=1e-5):
    """Repack the PyTorch NeuralTensorLayer parameters for the kernel.

    The eval-mode BatchNorm1d(nrel*nhid) affine (scale s, shift t) and the `b`
    bias are folded into the matmul weights:
        z_bn = (bil + lin + b) * s + t  =  bil*s + lin*s + (b*s + t)
    so the kernel has no per-row broadcast scaling at all.
    """
    w = np.asarray(w, np.float32)
    v = np.asarray(v, np.float32)
    b = np.asarray(b, np.float32)
    u = np.asarray(u, np.float32)
    nrel, nhid, two_d = v.shape
    d = two_d // 2
    rh = nrel * nhid

    if bilinear:
        s = np.asarray(bn_gamma, np.float32) / np.sqrt(np.asarray(bn_var, np.float32) + eps)
        t = np.asarray(bn_beta, np.float32) - np.asarray(bn_mean, np.float32) * s
    else:
        s = np.ones((rh,), np.float32)
        t = np.zeros((rh,), np.float32)

    p = {}
    # linear term weights, BN scale folded into the columns:  (d, nrel*nhid)
    p["v1T"] = np.ascontiguousarray((v[:, :, :d].reshape(rh, d) * s[:, None]).T)
    p["v2T"] = np.ascontiguousarray((v[:, :, d:].reshape(rh, d) * s[:, None]).T)
    # single folded bias row
    p["bias"] = (b.reshape(rh) * s + t).reshape(1, rh).astype(np.float32)
    if bilinear:
        # wflat[p*d + q, r*nhid + h] = w[r, h, p, q] * s[r*nhid + h]
        p["wflat"] = np.ascontiguousarray((w.reshape(rh, d * d) * s[:, None]).T)
        # 0/1 selection matrices that build the outer-product features by matmul:
        #   (tl @ rep)[e, p*d+q]  = tl[e, p]
        #   (hd @ tile)[e, p*d+q] = hd[e, q]
        p["rep"] = np.kron(np.eye(d, dtype=np.float32), np.ones((1, d), np.float32))
        p["tile"] = np.kron(np.ones((1, d), np.float32), np.eye(d, dtype=np.float32))
    # block-diagonal u packed into the narrow output slab: upad[r*nhid+h, r] = u[r,0,h]
    rout = _rout(nrel)
    upad = np.zeros((rh, rout), np.float32)
    upad[np.arange(rh), np.repeat(np.arange(nrel), nhid)] = u[:, 0, :].reshape(rh)
    p["upad"] = upad
    return {k: jnp.asarray(x) for k, x in p.items()}


# ------------------------------ Pallas kernel ------------------------------
def make_ntl_forward(ninp, nhid, nrel, *, bilinear=True, matmul_dtype=jnp.bfloat16,
                     interpret=False):
    """Returns forward(hd, tl, params) -> (n, nrel) logits (eval mode).

    matmul_dtype: operand dtype at the dot sites only (accumulation / elementwise
    math / tanh stay f32).  bf16 is the fast path on every TPU generation; pass
    jnp.float32 for bit-level parity tests against a reference.
    """
    d, H, R = ninp, nhid, nrel
    rh = R * H
    dd = d * d
    rout = _rout(R)
    md = matmul_dtype

    def kernel(*refs):
        if bilinear:
            (hd_ref, tl_ref, v1_ref, v2_ref, rep_ref, tile_ref, wflat_ref,
             bias_ref, u_ref, out_ref) = refs
        else:
            (hd_ref, tl_ref, v1_ref, v2_ref, bias_ref, u_ref, out_ref) = refs

        hd = hd_ref[...].astype(md)                                   # (TE, d)
        tl = tl_ref[...].astype(md)                                   # (TE, d)
        # linear term; BN scale already folded into v1T/v2T columns, bias folded.
        z = (jnp.dot(hd, v1_ref[...], preferred_element_type=jnp.float32)
             + jnp.dot(tl, v2_ref[...], preferred_element_type=jnp.float32)
             + bias_ref[...])                                         # (TE, rh) f32
        if bilinear:
            # outer-product features via two 0/1 selection matmuls (no in-kernel
            # reshape), contracted ONCE against wflat (K = d*d = 256, lane aligned).
            rep_tl = jnp.dot(tl, rep_ref[...], preferred_element_type=jnp.float32)
            til_hd = jnp.dot(hd, tile_ref[...], preferred_element_type=jnp.float32)
            op = (rep_tl * til_hd).astype(md)                         # (TE, d*d)
            z = z + jnp.dot(op, wflat_ref[...], preferred_element_type=jnp.float32)
        # tanh (EUP, f32), then the block-diagonal u contraction into the narrow
        # (TE, rout) output slab; the wrapper slices the first R columns.
        out_ref[...] = jnp.dot(jnp.tanh(z).astype(md), u_ref[...],
                               preferred_element_type=jnp.float32)

    def forward(hd, tl, params):
        n_edges = hd.shape[0]
        te = _choose_edge_tile(n_edges)
        ep = _round_up(max(n_edges, 1), te)
        hd = jnp.asarray(hd, jnp.float32)
        tl = jnp.asarray(tl, jnp.float32)
        if ep != n_edges:
            hd = jnp.pad(hd, ((0, ep - n_edges), (0, 0)))
            tl = jnp.pad(tl, ((0, ep - n_edges), (0, 0)))

        def full(shape):
            nd = len(shape)
            return pl.BlockSpec(shape, lambda e, _nd=nd: (0,) * _nd)  # resident weight

        args = [hd, tl, params["v1T"].astype(md), params["v2T"].astype(md)]
        in_specs = [pl.BlockSpec((te, d), lambda e: (e, 0)),
                    pl.BlockSpec((te, d), lambda e: (e, 0)),
                    full((d, rh)), full((d, rh))]
        if bilinear:
            args += [params["rep"].astype(md), params["tile"].astype(md),
                     params["wflat"].astype(md)]
            in_specs += [full((d, dd)), full((d, dd)), full((dd, rh))]
        args += [params["bias"], params["upad"].astype(md)]
        in_specs += [full((1, rh)), full((rh, rout))]

        out = pl.pallas_call(
            kernel,
            out_shape=jax.ShapeDtypeStruct((ep, rout), jnp.float32),
            grid=(ep // te,),
            in_specs=in_specs,
            out_specs=pl.BlockSpec((te, rout), lambda e: (e, 0)),
            compiler_params=pltpu.CompilerParams(dimension_semantics=("parallel",)),
            interpret=interpret,
        )(*args)
        return out[:n_edges, :R]

    return forward


# --------------------------- pure-JAX reference ---------------------------
def ntl_reference(hd, tl, w, v, b, u, *, bilinear=True, bn_gamma=None, bn_beta=None,
                  bn_mean=None, bn_var=None, eps=1e-5):
    """Direct transcription of NeuralTensorLayer.forward (eval-mode BatchNorm)."""
    nrel, nhid, _ = v.shape
    n = hd.shape[0]
    linear = jnp.einsum("rhj,ej->rhe", v, jnp.concatenate([hd, tl], axis=1),
                        precision="highest")
    z = linear + b                                                    # b: (nrel, nhid, 1)
    if bilinear:
        bil = jnp.einsum("ep,rhpq,eq->rhe", tl, w, hd, precision="highest")
        z = z + bil
        zf = z.reshape(nrel * nhid, n).T                              # (n, nrel*nhid)
        zf = (zf - bn_mean) / jnp.sqrt(bn_var + eps) * bn_gamma + bn_beta
        z = zf.T.reshape(nrel, nhid, n)
    return jnp.einsum("rh,rhe->er", u[:, 0, :], jnp.tanh(z), precision="highest")


# ---------------------------------- main ----------------------------------
if __name__ == "__main__":
    NINP, NHID, NREL = 16, 8, 3          # FLAGS.ntl_inp, FLAGS.ntl_hidden_dim, nrel
    N_EDGES = 13                          # number of (hd, tl) pairs
    RH = NREL * NHID

    keys = jax.random.split(jax.random.PRNGKey(0), 10)
    hd = jax.random.normal(keys[0], (N_EDGES, NINP), jnp.float32)
    tl = jax.random.normal(keys[1], (N_EDGES, NINP), jnp.float32)
    # parameters exactly as in NeuralTensorLayer.__init__
    w = 0.001 * jax.random.normal(keys[2], (NREL, NHID, NINP, NINP), jnp.float32)
    v = 0.001 * jax.random.normal(keys[3], (NREL, NHID, 2 * NINP), jnp.float32)
    b = jnp.zeros((NREL, NHID, 1), jnp.float32)
    u = 0.001 * jax.random.normal(keys[4], (NREL, 1, NHID), jnp.float32)
    # BatchNorm1d(nrel*nhid) eval-mode statistics (non-trivial so the fold is tested)
    bn_gamma = 1.0 + 0.1 * jax.random.normal(keys[5], (RH,), jnp.float32)
    bn_beta = 0.1 * jax.random.normal(keys[6], (RH,), jnp.float32)
    bn_mean = 0.1 * jax.random.normal(keys[7], (RH,), jnp.float32)
    bn_var = 0.5 + jax.random.uniform(keys[8], (RH,), jnp.float32)
    # TODO(synk): training-mode BatchNorm (batch statistics) is not implemented;
    # the kernel folds the eval-mode running-stats affine into the weights.

    params = prepare_ntl_params(w, v, b, u, bilinear=True, bn_gamma=bn_gamma,
                                bn_beta=bn_beta, bn_mean=bn_mean, bn_var=bn_var)
    ref = ntl_reference(hd, tl, w, v, b, u, bilinear=True, bn_gamma=bn_gamma,
                        bn_beta=bn_beta, bn_mean=bn_mean, bn_var=bn_var)

    # fast path: bf16 matmul operands (f32 accumulation / elementwise / tanh)
    ntl_fast = jax.jit(make_ntl_forward(NINP, NHID, NREL, bilinear=True,
                                        matmul_dtype=jnp.bfloat16))
    out_fast = ntl_fast(hd, tl, params)
    jax.block_until_ready(out_fast)

    # parity path: f32 matmul operands (for exact reference checks)
    ntl_exact = jax.jit(make_ntl_forward(NINP, NHID, NREL, bilinear=True,
                                         matmul_dtype=jnp.float32))
    out_exact = ntl_exact(hd, tl, params)
    jax.block_until_ready(out_exact)

    # non-bilinear branch of the module (no BatchNorm)
    params_nb = prepare_ntl_params(w, v, b, u, bilinear=False)
    ntl_nb = jax.jit(make_ntl_forward(NINP, NHID, NREL, bilinear=False,
                                      matmul_dtype=jnp.float32))
    out_nb = ntl_nb(hd, tl, params_nb)
    jax.block_until_ready(out_nb)
    ref_nb = ntl_reference(hd, tl, w, v, b, u, bilinear=False)

    ref_np = np.asarray(ref)
    assert out_exact.shape == (N_EDGES, NREL)
    np.testing.assert_allclose(np.asarray(out_exact), ref_np, rtol=2e-4, atol=1e-7)
    np.testing.assert_allclose(np.asarray(out_fast), ref_np, rtol=5e-2, atol=5e-6)
    np.testing.assert_allclose(np.asarray(out_nb), np.asarray(ref_nb), rtol=2e-4, atol=1e-7)

    print("KERNEL_OK")
</pallas_src>

<mosaic_0001>
module attributes {stable_mosaic.version = 11 : i64} {
  func.func @kernel(%arg0: i32, %arg1: memref<8x16xf32, #tpu.memory_space<vmem>>, %arg2: memref<8x16xf32, #tpu.memory_space<vmem>>, %arg3: memref<16x24xbf16, #tpu.memory_space<vmem>>, %arg4: memref<16x24xbf16, #tpu.memory_space<vmem>>, %arg5: memref<16x256xbf16, #tpu.memory_space<vmem>>, %arg6: memref<16x256xbf16, #tpu.memory_space<vmem>>, %arg7: memref<256x24xbf16, #tpu.memory_space<vmem>>, %arg8: memref<1x24xf32, #tpu.memory_space<vmem>>, %arg9: memref<24x8xbf16, #tpu.memory_space<vmem>>, %arg10: memref<8x8xf32, #tpu.memory_space<vmem>>) attributes {dimension_semantics = [#tpu.dimension_semantics<parallel>], iteration_bounds = array<i64: 2>, scalar_prefetch = 0 : i64, scratch_operands = 0 : i64, tpu.core_type = #tpu.core_type<tc>, window_params = [{transform_indices = @transform_0, window_bounds = array<i64: 8, 16>}, {transform_indices = @transform_1, window_bounds = array<i64: 8, 16>}, {pipeline_mode = #tpu.pipeline_mode<synchronous>, transform_indices = @transform_2, window_bounds = array<i64: 16, 24>}, {pipeline_mode = #tpu.pipeline_mode<synchronous>, transform_indices = @transform_3, window_bounds = array<i64: 16, 24>}, {pipeline_mode = #tpu.pipeline_mode<synchronous>, transform_indices = @transform_4, window_bounds = array<i64: 16, 256>}, {pipeline_mode = #tpu.pipeline_mode<synchronous>, transform_indices = @transform_5, window_bounds = array<i64: 16, 256>}, {pipeline_mode = #tpu.pipeline_mode<synchronous>, transform_indices = @transform_6, window_bounds = array<i64: 256, 24>}, {pipeline_mode = #tpu.pipeline_mode<synchronous>, transform_indices = @transform_7, window_bounds = array<i64: 1, 24>}, {pipeline_mode = #tpu.pipeline_mode<synchronous>, transform_indices = @transform_8, window_bounds = array<i64: 24, 8>}, {transform_indices = @transform_9, window_bounds = array<i64: 8, 8>}]} {
    %c0 = arith.constant 0 : index
    %c0_0 = arith.constant 0 : index
    %0 = vector.load %arg1[%c0, %c0_0] : memref<8x16xf32, #tpu.memory_space<vmem>>, vector<8x16xf32>
    %1 = arith.truncf %0 : vector<8x16xf32> to vector<8x16xbf16>
    %c0_1 = arith.constant 0 : index
    %c0_2 = arith.constant 0 : index
    %2 = vector.load %arg2[%c0_1, %c0_2] : memref<8x16xf32, #tpu.memory_space<vmem>>, vector<8x16xf32>
    %3 = arith.truncf %2 : vector<8x16xf32> to vector<8x16xbf16>
    %c0_3 = arith.constant 0 : index
    %c0_4 = arith.constant 0 : index
    %4 = vector.load %arg3[%c0_3, %c0_4] : memref<16x24xbf16, #tpu.memory_space<vmem>>, vector<16x24xbf16>
    %cst = arith.constant dense<0.000000e+00> : vector<8x24xf32>
    %5 = tpu.matmul %1, %4, %cst {dimension_numbers = #tpu.dot_dimension_numbers<[1], [0], [0], [1], [0, 0, 1, 1], [], []>} : vector<8x16xbf16>, vector<16x24xbf16>, vector<8x24xf32> -> vector<8x24xf32>
    %c0_5 = arith.constant 0 : index
    %c0_6 = arith.constant 0 : index
    %6 = vector.load %arg4[%c0_5, %c0_6] : memref<16x24xbf16, #tpu.memory_space<vmem>>, vector<16x24xbf16>
    %cst_7 = arith.constant dense<0.000000e+00> : vector<8x24xf32>
    %7 = tpu.matmul %3, %6, %cst_7 {dimension_numbers = #tpu.dot_dimension_numbers<[1], [0], [0], [1], [0, 0, 1, 1], [], []>} : vector<8x16xbf16>, vector<16x24xbf16>, vector<8x24xf32> -> vector<8x24xf32>
    %8 = arith.addf %5, %7 : vector<8x24xf32>
    %c0_8 = arith.constant 0 : index
    %c0_9 = arith.constant 0 : index
    %9 = vector.load %arg8[%c0_8, %c0_9] : memref<1x24xf32, #tpu.memory_space<vmem>>, vector<1x24xf32>
    %10 = vector.broadcast %9 : vector<1x24xf32> to vector<8x24xf32>
    %11 = arith.addf %8, %10 : vector<8x24xf32>
    %c0_10 = arith.constant 0 : index
    %c0_11 = arith.constant 0 : index
    %12 = vector.load %arg5[%c0_10, %c0_11] : memref<16x256xbf16, #tpu.memory_space<vmem>>, vector<16x256xbf16>
    %cst_12 = arith.constant dense<0.000000e+00> : vector<8x256xf32>
    %13 = tpu.matmul %3, %12, %cst_12 {dimension_numbers = #tpu.dot_dimension_numbers<[1], [0], [0], [1], [0, 0, 1, 1], [], []>} : vector<8x16xbf16>, vector<16x256xbf16>, vector<8x256xf32> -> vector<8x256xf32>
    %c0_13 = arith.constant 0 : index
    %c0_14 = arith.constant 0 : index
    %14 = vector.load %arg6[%c0_13, %c0_14] : memref<16x256xbf16, #tpu.memory_space<vmem>>, vector<16x256xbf16>
    %cst_15 = arith.constant dense<0.000000e+00> : vector<8x256xf32>
    %15 = tpu.matmul %1, %14, %cst_15 {dimension_numbers = #tpu.dot_dimension_numbers<[1], [0], [0], [1], [0, 0, 1, 1], [], []>} : vector<8x16xbf16>, vector<16x256xbf16>, vector<8x256xf32> -> vector<8x256xf32>
    %16 = arith.mulf %13, %15 : vector<8x256xf32>
    %17 = arith.truncf %16 : vector<8x256xf32> to vector<8x256xbf16>
    %c0_16 = arith.constant 0 : index
    %c0_17 = arith.constant 0 : index
    %18 = vector.load %arg7[%c0_16, %c0_17] : memref<256x24xbf16, #tpu.memory_space<vmem>>, vector<256x24xbf16>
    %cst_18 = arith.constant dense<0.000000e+00> : vector<8x24xf32>
    %19 = tpu.matmul %17, %18, %cst_18 {dimension_numbers = #tpu.dot_dimension_numbers<[1], [0], [0], [1], [0, 0, 1, 1], [], []>} : vector<8x256xbf16>, vector<256x24xbf16>, vector<8x24xf32> -> vector<8x24xf32>
    %20 = arith.addf %11, %19 : vector<8x24xf32>
    %21 = math.tanh %20 : vector<8x24xf32>
    %22 = arith.truncf %21 : vector<8x24xf32> to vector<8x24xbf16>
    %c0_19 = arith.constant 0 : index
    %c0_20 = arith.constant 0 : index
    %23 = vector.load %arg9[%c0_19, %c0_20] : memref<24x8xbf16, #tpu.memory_space<vmem>>, vector<24x8xbf16>
    %cst_21 = arith.constant dense<0.000000e+00> : vector<8x8xf32>
    %24 = tpu.matmul %22, %23, %cst_21 {dimension_numbers = #tpu.dot_dimension_numbers<[1], [0], [0], [1], [0, 0, 1, 1], [], []>} : vector<8x24xbf16>, vector<24x8xbf16>, vector<8x8xf32> -> vector<8x8xf32>
    %c0_22 = arith.constant 0 : index
    %c0_23 = arith.constant 0 : index
    %25 = vector.load %arg10[%c0_22, %c0_23] : memref<8x8xf32, #tpu.memory_space<vmem>>, vector<8x8xf32>
    tpu.vector_store %arg10[%c0_22, %c0_23], %24 {strides = array<i32>} : memref<8x8xf32, #tpu.memory_space<vmem>>, vector<8x8xf32>,
    return
  }
  func.func @transform_0(%arg0: i32) -> (i32, i32) {
    %c0_i32 = arith.constant 0 : i32
    %c0_i32_0 = arith.constant 0 : i32
    return %arg0, %c0_i32 : i32, i32
  }
  func.func @transform_1(%arg0: i32) -> (i32, i32) {
    %c0_i32 = arith.constant 0 : i32
    %c0_i32_0 = arith.constant 0 : i32
    return %arg0, %c0_i32 : i32, i32
  }
  func.func @transform_2(%arg0: i32) -> (i32, i32) {
    %c0_i32 = arith.constant 0 : i32
    %c0_i32_0 = arith.constant 0 : i32
    %c0_i32_1 = arith.constant 0 : i32
    return %c0_i32, %c0_i32_0 : i32, i32
  }
  func.func @transform_3(%arg0: i32) -> (i32, i32) {
    %c0_i32 = arith.constant 0 : i32
    %c0_i32_0 = arith.constant 0 : i32
    %c0_i32_1 = arith.constant 0 : i32
    return %c0_i32, %c0_i32_0 : i32, i32
  }
  func.func @transform_4(%arg0: i32) -> (i32, i32) {
    %c0_i32 = arith.constant 0 : i32
    %c0_i32_0 = arith.constant 0 : i32
    %c0_i32_1 = arith.constant 0 : i32
    return %c0_i32, %c0_i32_0 : i32, i32
  }
  func.func @transform_5(%arg0: i32) -> (i32, i32) {
    %c0_i32 = arith.constant 0 : i32
    %c0_i32_0 = arith.constant 0 : i32
    %c0_i32_1 = arith.constant 0 : i32
    return %c0_i32, %c0_i32_0 : i32, i32
  }
  func.func @transform_6(%arg0: i32) -> (i32, i32) {
    %c0_i32 = arith.constant 0 : i32
    %c0_i32_0 = arith.constant 0 : i32
    %c0_i32_1 = arith.constant 0 : i32
    return %c0_i32, %c0_i32_0 : i32, i32
  }
  func.func @transform_7(%arg0: i32) -> (i32, i32) {
    %c0_i32 = arith.constant 0 : i32
    %c0_i32_0 = arith.constant 0 : i32
    %c0_i32_1 = arith.constant 0 : i32
    return %c0_i32, %c0_i32_0 : i32, i32
  }
  func.func @transform_8(%arg0: i32) -> (i32, i32) {
    %c0_i32 = arith.constant 0 : i32
    %c0_i32_0 = arith.constant 0 : i32
    %c0_i32_1 = arith.constant 0 : i32
    return %c0_i32, %c0_i32_0 : i32, i32
  }
  func.func @transform_9(%arg0: i32) -> (i32, i32) {
    %c0_i32 = arith.constant 0 : i32
    %c0_i32_0 = arith.constant 0 : i32
    return %arg0, %c0_i32 : i32, i32
  }
}

</mosaic_0001>

<bundles_post_ra>
// kernel: forward.1
= control target key start
LH: loop header
LB: loop body
LE: loop exit
PB: predicated region body
PF: predicated region fallthrough
CT: control target
= control target key end

     0   :  { %s942_s30 = smov 0   ;;  %s1060_s0 = inlined_call_operand.vmem [shape: f32[16,16], index: 0, kind: input, shape index: {}]   ;;  %s1061_s1 = inlined_call_operand.vmem [shape: f32[16,16], index: 1, kind: input, shape index: {}]   ;;  %s1062_s2 = inlined_call_operand.vmem [shape: bf16[16,24], index: 2, kind: input, shape index: {}]   ;;  %s1063_s3 = inlined_call_operand.vmem [shape: bf16[16,24], index: 3, kind: input, shape index: {}]   ;;  %s1064_s4 = inlined_call_operand.vmem [shape: bf16[16,256], index: 4, kind: input, shape index: {}]   ;;  %s1065_s5 = inlined_call_operand.vmem [shape: bf16[16,256], index: 5, kind: input, shape index: {}]   ;;  %s1066_s6 = inlined_call_operand.vmem [shape: bf16[256,24], index: 6, kind: input, shape index: {}]   ;;  %s1067_s7 = inlined_call_operand.vmem [shape: f32[1,24], index: 7, kind: input, shape index: {}]   ;;  %s1068_s8 = inlined_call_operand.vmem [shape: bf16[24,8], index: 8, kind: input, shape index: {}]   ;;  %s1069_s9 = inlined_call_operand.vmem [shape: f32[16,8], index: 9, kind: output, shape index: {}]  }
   0x1 LB: > { %s741_s10 = sadd.s32 4294967295, %s890_s30   ;;  %p745_p0 = scmp.ge.s32.totalorder %s890_s30, 1  ;;  %s890_s30 = sphi %s942_s30, %s19_s30  }
   0x2   : > { %p295_p1 = scmp.lt.s32.totalorder %s890_s30, 3 }
   0x4   : > { %p296_p2 = pnand %p745_p0, %p295_p1 }
   0x5   : > { %p333_p3 = scmp.lt.s32.totalorder (!%p296_p2), %s741_s10, 1 }
   0x6   : > { %299 = sbr.rel (%p296_p2) target bundleno = 444 (0x1bc), region = 56 }
   0xb   : > { %v851_v0 = vld [vmem:[%s1063_s3] sm:$0xff]  ;;  %v853_v3 = vld [vmem:[%s1064_s4 + $0x4] sm:$0xf0]  ;;  %v763_v5 = vld [vmem:[%s1064_s4 + $0x8] sm:$0xf0]  ;;  %s1071_s10 = smov (!%p333_p3, %s741_s10), 1 }
   0xc   : > { %v850_v1 = vld [vmem:[%s1062_s2] sm:$0xff]  ;;  %371 = vmatpush.bf16.msra.mxu0 %v851_v0  ;;  %v855_v9 = vld [vmem:[%s1065_s5 + $0x4] sm:$0xf0]  ;;  %v863_v10 = vld [vmem:[%s1066_s6 + $0x38] sm:$0xff]  ;;  %s986_s16 = sshll.u32 %s1071_s10, 3  ;;  %vm360_vm0 = vcmask 130048  }
   0xd   : > { %v761_v2 = vld [vmem:[%s1064_s4] sm:$0xf]  ;;  %v852_v4 = vld [vmem:[%s1064_s4 + $0x4] sm:$0xf]  ;;  %393 = vmatpush.bf16.msra.mxu1 %v850_v1  ;;  %v773_v13 = vld [vmem:[%s1065_s5 + $0x8] sm:$0xf0]  ;;  %s340_s19 = scalar_lea.vmem %s1061_s1, %s986_s16  ;;  %s336_s22 = scalar_lea.vmem %s1060_s0, %s986_s16 }
   0xe   : > { %v762_v6 = vor.u32 %v853_v3, %v761_v2  ;;  %v766_v7 = vor.u32 %v852_v4, %v763_v5  ;;  %v771_v8 = vld [vmem:[%s1065_s5] sm:$0xf]  ;;  %v854_v12 = vld [vmem:[%s1065_s5 + $0x4] sm:$0xf]  ;;  %v871_v14 = vld [vmem:[%s1066_s6 + $0x78] sm:$0xff]  ;;  %vm657_vm1 = vcmask 1043456   ;;  %s344_s21 = scalar_lea.vmem %s1069_s9, %s986_s16 }
   0xf   : > { %v772_v11 = vor.u32 %v855_v9, %v771_v8  ;;  %v776_v15 = vor.u32 %v854_v12, %v773_v13  ;;  %v348_v16 = vld [vmem:[%s340_s19] sm:$0xff]  ;;  %v862_v20 = vld [vmem:[%s1066_s6 + $0x30] sm:$0xff]  ;;  %v861_v22 = vld [vmem:[%s1066_s6 + $0x28] sm:$0xff]  ;;  %vm653_vm2 = vcmask 195584   ;;  %vm674_vm3 = vcmask 64512  }
  0x10   : > { %423 = vmatpush.bf16.msra.mxu2 %v762_v6  ;;  %436 = vmatpush.bf16.msra.mxu3 %v766_v7  ;;  %v346_v17 = vld [vmem:[%s336_s22] sm:$0xff]  ;;  %v349_v18 = vpack.c.bf16 %v348_v16, %v348_v16  ;;  %v870_v21 = vld [vmem:[%s1066_s6 + $0x70] sm:$0xff]  ;;  %v869_v23 = vld [vmem:[%s1066_s6 + $0x68] sm:$0xff] }
  0x11   : > { %461 = vmatpush.bf16.msrb.mxu0 %v772_v11  ;;  %474 = vmatpush.bf16.msrb.mxu1 %v776_v15  ;;  %v347_v19 = vpack.c.bf16 %v346_v17, %v346_v17  ;;  %v860_v24 = vld [vmem:[%s1066_s6 + $0x20] sm:$0xff]  ;;  %v859_v26 = vld [vmem:[%s1066_s6 + $0x18] sm:$0xff]  ;;  %v858_v28 = vld [vmem:[%s1066_s6 + $0x10] sm:$0xff] }
  0x12   : > { %753 = vmatmul.msk.bf16.vlgmr.msra.gmra.mxu0 %vm360_vm0, %v349_v18  ;;  %v868_v25 = vld [vmem:[%s1066_s6 + $0x60] sm:$0xff]  ;;  %v867_v27 = vld [vmem:[%s1066_s6 + $0x58] sm:$0xff]  ;;  %v866_v29 = vld [vmem:[%s1066_s6 + $0x50] sm:$0xff] }
  0x13   : > { %758 = vmatmul.msk.bf16.vlgmr.msra.gmra.mxu1 %vm360_vm0, %v347_v19  ;;  %767 = vmatmul.msk.bf16.vlgmr.msra.gmra.mxu2 %vm360_vm0, %v349_v18  ;;  %v857_v30 = vld [vmem:[%s1066_s6 + $0x8] sm:$0xff]  ;;  %v856_v32 = vld [vmem:[%s1066_s6] sm:$0xff] }
  0x14   : > { %612 = vmatpush.bf16.msrb.mxu2 %v863_v10  ;;  %625 = vmatpush.bf16.msrb.mxu3 %v871_v14  ;;  %v865_v31 = vld [vmem:[%s1066_s6 + $0x48] sm:$0xff]  ;;  %v864_v33 = vld [vmem:[%s1066_s6 + $0x40] sm:$0xff] }
  0x15   : > { %768 = vmatmul.msk.bf16.vlgmr.msra.gmra.mxu3 %vm360_vm0, %v349_v18  ;;  %v643_v34 = vld [vmem:[%s1068_s8 + $0x8] sm:$0xf]  ;;  %v872_v55 = vld [vmem:[%s1068_s8] sm:$0xff] }
  0x16   : > { %v649_v35 = vunpack.c.l.b16 %v643_v34  ;;  %v881_v56 = vld [vmem:[%s1067_s7] ss:$0 sm:$0xff] }
  0x18   : > { %613 = vmatpush.bf16.msrb.mxu2 %v862_v20  ;;  %626 = vmatpush.bf16.msrb.mxu3 %v870_v21  ;;  %v651_v36 = vpack.c.b16 %v649_v35, %v649_v35 }
  0x1a   : > { %v659_v37 = vsel %vm657_vm1, %v651_v36, 0 }
  0x1b   : > { %667 = vmatpush.bf16.msra.mxu0 %v659_v37 }
  0x1c   : > { %614 = vmatpush.bf16.msrb.mxu2 %v861_v22  ;;  %627 = vmatpush.bf16.msrb.mxu3 %v869_v23 }
  0x1f   : > { %668 = vmatpush.bf16.msra.mxu0 %v872_v55 }
  0x20   : > { %615 = vmatpush.bf16.msrb.mxu2 %v860_v24  ;;  %628 = vmatpush.bf16.msrb.mxu3 %v868_v25 }
  0x22   : > { %777 = vmatmul.msk.bf16.vlgmr.msrb.gmra.mxu0 %vm360_vm0, %v347_v19 }
  0x23   : > { %778 = vmatmul.msk.bf16.vlgmr.msrb.gmra.mxu1 %vm360_vm0, %v347_v19 }
  0x24   : > { %616 = vmatpush.bf16.msrb.mxu2 %v859_v26  ;;  %629 = vmatpush.bf16.msrb.mxu3 %v867_v27 }
  0x28   : > { %617 = vmatpush.bf16.msrb.mxu2 %v858_v28  ;;  %630 = vmatpush.bf16.msrb.mxu3 %v866_v29 }
  0x2c   : > { %618 = vmatpush.bf16.msrb.mxu2 %v857_v30  ;;  %631 = vmatpush.bf16.msrb.mxu3 %v865_v31 }
  0x30   : > { %619 = vmatpush.bf16.msrb.mxu2 %v856_v32  ;;  %632 = vmatpush.bf16.msrb.mxu3 %v864_v33 }
  0x8f   : > { %v373_v38 = vpop.f32.mrf.mxu0 }
  0x90   : > { %v395_v39 = vpop.f32.mrf.mxu1 }
  0x91   : > { %v396_v40 = vadd.f32 %v395_v39, %v373_v38 }
  0x93   : > { %v403_v59 = vadd.f32 %v881_v56, %v396_v40 }
  0x96   : > { %v425_v41 = vpop.f32.mrf.mxu2 }
  0x97   : > { %v375_v43 = vpop.f32.mrf.mxu0 }
  0x98   : > { %v438_v42 = vpop.f32.mrf.mxu3  ;;  %v397_v44 = vpop.f32.mrf.mxu1 }
  0x9e   : > { %v427_v45 = vpop.f32.mrf.mxu2 }
  0x9f   : > { %v463_v47 = vpop.f32.mrf.mxu0 }
  0xa0   : > { %v440_v46 = vpop.f32.mrf.mxu3  ;;  %v476_v48 = vpop.f32.mrf.mxu1  ;;  %v480_v49 = vmul.f32 %v463_v47, %v425_v41 }
  0xa1   : > { %v481_v50 = vmul.f32 %v476_v48, %v438_v42 }
  0xa2   : > { %v482_v51 = vpack.c.bf16 %v480_v49, %v480_v49 }
  0xa3   : > { %v483_v52 = vpack.c.bf16 %v481_v50, %v481_v50 }
  0xa4   : > { %620 = vmatmul.bf16.vlgmr.msrb.gmra.mxu2 %v482_v51 }
  0xa5   : > { %633 = vmatmul.bf16.vlgmr.msrb.gmra.mxu3 %v483_v52 }
  0xa7   : > { %v465_v53 = vpop.f32.mrf.mxu0 }
  0xa8   : > { %v478_v54 = vpop.f32.mrf.mxu1 }
 0x127   : > { %v621_v57 = vpop.f32.mrf.mxu2 }
 0x128   : > { %v634_v58 = vpop.f32.mrf.mxu3 }
 0x129   : > { %v635_v60 = vadd.f32 %v634_v58, %v621_v57 }
 0x12b   : > { %v638_v61 = vadd.f32 %v635_v60, %v403_v59 }
 0x12d   : > { %882 = vtanh.f32 %v638_v61 }
 0x12f   : > { %v623_v62 = vpop.f32.mrf.mxu2 }
 0x130   : > { %v636_v63 = vpop.f32.mrf.mxu3 }
 0x133   : > { %v883_v0 = vpop.eup %882 }
 0x134   : > { %v640_v1 = vpack.c.bf16 %v883_v0, %v883_v0 }
 0x136   : > { %847 = vmatmul.msk.bf16.vlgmr.msra.gmra.mxu0 %vm653_vm2, %v640_v1 }
 0x1b3   : > { %v670_v2 = vpop.f32.mrf.mxu0 }
 0x1b4   : > { %675 = vst.msk [vmem:[%s344_s21] sm:$0xff] %vm674_vm3, %v670_v2 }
 0x1bb   : > { %v672_v3 = vpop.f32.mrf.mxu0 }
 0x1bc PF: > { %s19_s30 = sadd.s32 1, %s890_s30  }
 0x1bd   : > { %p16_p4 = scmp.ge.s32.totalorder %s19_s30, 4  }
 0x1bf   :  { %18 = sbr.rel (!%p16_p4) target bundleno = 1 (0x1), region = 89 }

</bundles_post_ra>
